<compile_context>
chip_gen: v7x
topology: tpu7x:2x2x1
jax: 0.10.0
libtpu: 0.0.40
codegen_flags: <defaults>
</compile_context>

<pallas_src>
import functools

import jax
import jax.numpy as jnp
from jax import lax
from jax.experimental import pallas as pl
from jax.experimental.pallas import tpu as pltpu


def _conv_block_kernel(x_ref, w1_ref, w23_ref, o_ref, *, W, HW):
    """Fused circular conv1 -> circular conv2 -> 1x1 conv3 for one batch tile.

    x_ref  : (bt, Cin_p, HW)          channel-major, spatial flattened on lanes
    w1_ref : (3, Cout, 3*Cin_p + 1)   per-dy stacked conv1 taps; b1 in the last
                                      column of the dy=1 slice (ones-row trick)
    w23_ref: (3, Cout, 3*Cout + 1)    w3 @ (per-dy stacked conv2 taps); the
                                      last column of dy=1 holds w3@b2 + b3
    o_ref  : (bt, Cout, HW)
    """
    f32 = jnp.float32

    # ---- hoisted constants: computed once, reused by both convs & all images
    col = lax.broadcasted_iota(jnp.int32, (1, HW), 1) % W
    m_left = col >= 1          # lanes where the w-1 tap does NOT wrap
    m_right = col < (W - 1)    # lanes where the w+1 tap does NOT wrap
    ones_row = jnp.ones((1, HW), f32)

    w1 = [w1_ref[d] for d in range(3)]     # 3 x (Cout, 3*Cin_p+1)
    w23 = [w23_ref[d] for d in range(3)]   # 3 x (Cout, 3*Cout+1)

    def circ_conv3x3(v, w_dy):
        # v: (C, HW) f32 with C % 8 == 0.  Returns (Cout, HW) f32.
        # Horizontal (dx) circular wrap is applied to the input (2 masked lane
        # rotates); vertical (dy) wrap is applied to the partial results
        # (2 plain lane rotates of +-W).  Both commute with the channel
        # contraction, so 3 MXU dots replace the 9 per-tap dots, and the bias
        # rides the ones row (no separate broadcast-add, no zero-init).
        left = jnp.where(m_left, pltpu.roll(v, 1, 1),
                         pltpu.roll(v, HW - W + 1, 1))
        right = jnp.where(m_right, pltpu.roll(v, HW - 1, 1),
                          pltpu.roll(v, W - 1, 1))
        xs = jnp.concatenate([left, v, right, ones_row], axis=0)  # (3C+1, HW)
        p0 = jnp.dot(w_dy[0], xs, preferred_element_type=f32)
        p1 = jnp.dot(w_dy[1], xs, preferred_element_type=f32)
        p2 = jnp.dot(w_dy[2], xs, preferred_element_type=f32)
        return pltpu.roll(p0, W, 1) + p1 + pltpu.roll(p2, HW - W, 1)

    for n in range(x_ref.shape[0]):        # batch tile (default 1; N on grid)
        v = x_ref[n].astype(f32)           # (Cin_p, HW)
        y = circ_conv3x3(v, w1)            # conv1 (circular 3x3, bias folded)
        y = circ_conv3x3(y, w23)           # conv2 (circular 3x3) + conv3 (1x1)
        o_ref[n] = y.astype(o_ref.dtype)


def _stack_3x3(w, b):
    """torch OIHW (Cout, Cin, 3, 3) + (Cout,) -> (3, Cout, 3*Cin + 1).

    Slice dy holds the three dx tap blocks side by side along the contraction
    dim (matching the in-kernel [left | center | right | ones] stack); the
    bias is folded into the last column of the dy=1 (un-rolled) slice.
    """
    rows = []
    for dy in range(3):
        blocks = [w[:, :, dy, dx] for dx in range(3)]
        bias_col = (b if dy == 1 else jnp.zeros_like(b))[:, None]
        rows.append(jnp.concatenate(blocks + [bias_col], axis=1))
    return jnp.stack(rows, axis=0)


def conv_block2d_lin(x_nchw, params, *, batch_tile=1):
    """x_nchw: (N, Cin, H, W) float32 -> (N, Cout, H, W) float32."""
    w1, b1, w2, b2, w3, b3 = (params[k] for k in
                              ("w1", "b1", "w2", "b2", "w3", "b3"))
    N, Cin, H, W = x_nchw.shape
    Cout = w1.shape[0]
    HW = H * W
    assert N % batch_tile == 0
    assert Cout % 8 == 0, "Cout must be sublane-aligned for this kernel"

    # Free reshape: stays channel-major (spatial on lanes), no transpose pass.
    x_flat = x_nchw.reshape(N, Cin, HW)

    # Pad Cin to a multiple of 8 (zero channels, zero weights) so every
    # in-kernel sublane concat lands on tile-aligned offsets.
    Cin_p = -(-Cin // 8) * 8
    if Cin_p != Cin:
        x_flat = jnp.pad(x_flat, ((0, 0), (0, Cin_p - Cin), (0, 0)))
        w1 = jnp.pad(w1, ((0, 0), (0, Cin_p - Cin), (0, 0), (0, 0)))

    # Stacked-tap weights (host-side, tiny).
    w1s = _stack_3x3(w1, b1)                         # (3, Cout, 3*Cin_p + 1)
    w2s = _stack_3x3(w2, b2)                         # (3, Cout, 3*Cout + 1)
    w3m = w3.reshape(Cout, Cout)
    # Fold the 1x1 conv3 into conv2's stacked taps (exact: no nonlinearity
    # in between): w3 @ (W2_dy @ X) == (w3 @ W2_dy) @ X;  b3 rides the ones row.
    w23s = jnp.einsum("ok,dkn->don", w3m, w2s,
                      precision=jax.lax.Precision.HIGHEST)
    w23s = w23s.at[1, :, -1].add(b3)                 # (3, Cout, 3*Cout + 1)

    k1 = 3 * Cin_p + 1
    k2 = 3 * Cout + 1

    kernel = functools.partial(_conv_block_kernel, W=W, HW=HW)
    out = pl.pallas_call(
        kernel,
        out_shape=jax.ShapeDtypeStruct((N, Cout, HW), jnp.float32),
        grid=(N // batch_tile,),
        in_specs=[
            pl.BlockSpec((batch_tile, Cin_p, HW), lambda i: (i, 0, 0)),
            pl.BlockSpec((3, Cout, k1), lambda i: (0, 0, 0)),
            pl.BlockSpec((3, Cout, k2), lambda i: (0, 0, 0)),
        ],
        out_specs=pl.BlockSpec((batch_tile, Cout, HW), lambda i: (i, 0, 0)),
        compiler_params=pltpu.CompilerParams(
            dimension_semantics=("parallel",)),
        # VMEM footprint per step is a few hundred KiB at these shapes; if
        # H/W/C grow, re-budget batch_tile for v7x's 64 MiB (32 MiB scoped)
        # and set vmem_limit_bytes explicitly.
    )(x_flat, w1s, w23s)

    # (N, Cout, H*W) is already NCHW-ordered: reshape is free, no transpose.
    return out.reshape(N, Cout, H, W)


def init_params(key, n_ch_in, n_ch_out):
    """Deterministic synthetic init; weights stored torch-style (OIHW)."""
    k = jax.random.split(key, 6)

    def u(kk, shape, fan_in):
        bound = 1.0 / jnp.sqrt(fan_in)
        return jax.random.uniform(kk, shape, jnp.float32, -bound, bound)

    return dict(
        w1=u(k[0], (n_ch_out, n_ch_in, 3, 3), 9 * n_ch_in),
        b1=u(k[1], (n_ch_out,), 9 * n_ch_in),
        w2=u(k[2], (n_ch_out, n_ch_out, 3, 3), 9 * n_ch_out),
        b2=u(k[3], (n_ch_out,), 9 * n_ch_out),
        w3=u(k[4], (n_ch_out, n_ch_out, 1, 1), n_ch_out),
        b3=u(k[5], (n_ch_out,), n_ch_out),
    )


def _reference(x, params):
    """Pure-JAX reference (lax conv, NCHW/OIHW) matching the torch module."""
    def circ_pad(x):
        x = jnp.concatenate([x[:, :, -1:, :], x, x[:, :, :1, :]], axis=2)
        x = jnp.concatenate([x[:, :, :, -1:], x, x[:, :, :, :1]], axis=3)
        return x

    def conv(x, w, b):
        y = jax.lax.conv_general_dilated(
            x, w, window_strides=(1, 1), padding="VALID",
            dimension_numbers=("NCHW", "OIHW", "NCHW"))
        return y + b[None, :, None, None]

    x = circ_pad(x)
    x = conv(x, params["w1"], params["b1"])
    x = circ_pad(x)
    x = conv(x, params["w2"], params["b2"])
    x = conv(x, params["w3"], params["b3"])
    return x


if __name__ == "__main__":
    key = jax.random.PRNGKey(0)
    kx, kp = jax.random.split(key)

    N, Cin, Cout, H, W = 2, 4, 8, 16, 16
    x = jax.random.normal(kx, (N, Cin, H, W), jnp.float32)
    params = init_params(kp, Cin, Cout)

    out = jax.block_until_ready(conv_block2d_lin(x, params))

    ref = _reference(x, params)
    assert out.shape == (N, Cout, H, W)
    err = float(jnp.max(jnp.abs(out - ref)))
    assert err < 1e-3, err

    print("KERNEL_OK")
</pallas_src>

<mosaic_0001>
module attributes {stable_mosaic.version = 11 : i64} {
  func.func @_conv_block_kernel(%arg0: i32, %arg1: memref<1x8x256xf32, #tpu.memory_space<vmem>>, %arg2: memref<3x8x25xf32, #tpu.memory_space<vmem>>, %arg3: memref<3x8x25xf32, #tpu.memory_space<vmem>>, %arg4: memref<1x8x256xf32, #tpu.memory_space<vmem>>) attributes {dimension_semantics = [#tpu.dimension_semantics<parallel>], iteration_bounds = array<i64: 2>, scalar_prefetch = 0 : i64, scratch_operands = 0 : i64, tpu.core_type = #tpu.core_type<tc>, window_params = [{transform_indices = @transform_0, window_bounds = array<i64: 1, 8, 256>}, {pipeline_mode = #tpu.pipeline_mode<synchronous>, transform_indices = @transform_1, window_bounds = array<i64: 3, 8, 25>}, {pipeline_mode = #tpu.pipeline_mode<synchronous>, transform_indices = @transform_2, window_bounds = array<i64: 3, 8, 25>}, {transform_indices = @transform_3, window_bounds = array<i64: 1, 8, 256>}]} {
    %0 = tpu.iota {dimensions = array<i32: 1>} : vector<1x256xi32>
    %c16_i32 = arith.constant 16 : i32
    %c0_i32 = arith.constant 0 : i32
    %1 = arith.cmpi eq, %c16_i32, %c0_i32 : i32
    %c1_i32 = arith.constant 1 : i32
    %2 = arith.select %1, %c1_i32, %c16_i32 : i32
    %3 = vector.broadcast %2 : i32 to vector<1x256xi32>
    %4 = arith.remsi %0, %3 : vector<1x256xi32>
    %c0_i32_0 = arith.constant 0 : i32
    %5 = vector.broadcast %c0_i32_0 : i32 to vector<1x256xi32>
    %6 = arith.cmpi ne, %4, %5 : vector<1x256xi32>
    %c0_i32_1 = arith.constant 0 : i32
    %7 = vector.broadcast %c0_i32_1 : i32 to vector<1x256xi32>
    %8 = arith.cmpi slt, %4, %7 : vector<1x256xi32>
    %c0_i32_2 = arith.constant 0 : i32
    %9 = arith.cmpi slt, %2, %c0_i32_2 : i32
    %10 = vector.broadcast %9 : i1 to vector<1x256xi1>
    %11 = vector.broadcast %10 : vector<1x256xi1> to vector<1x256xi1>
    %12 = arith.xori %8, %11 : vector<1x256xi1>
    %13 = arith.andi %12, %6 : vector<1x256xi1>
    %14 = vector.broadcast %2 : i32 to vector<1x256xi32>
    %15 = arith.addi %4, %14 : vector<1x256xi32>
    %16 = arith.select %13, %15, %4 : vector<1x256xi1>, vector<1x256xi32>
    %c1_i32_3 = arith.constant 1 : i32
    %17 = vector.broadcast %c1_i32_3 : i32 to vector<1x256xi32>
    %18 = arith.cmpi sge, %16, %17 : vector<1x256xi32>
    %c15_i32 = arith.constant 15 : i32
    %19 = vector.broadcast %c15_i32 : i32 to vector<1x256xi32>
    %20 = arith.cmpi slt, %16, %19 : vector<1x256xi32>
    %cst = arith.constant 1.000000e+00 : f32
    %21 = vector.broadcast %cst : f32 to vector<1x256xf32>
    %c0 = arith.constant 0 : index
    %c0_4 = arith.constant 0 : index
    %c0_5 = arith.constant 0 : index
    %22 = vector.load %arg2[%c0, %c0_4, %c0_5] : memref<3x8x25xf32, #tpu.memory_space<vmem>>, vector<1x8x25xf32>
    %23 = vector.shape_cast %22 : vector<1x8x25xf32> to vector<8x25xf32>
    %c1 = arith.constant 1 : index
    %c0_6 = arith.constant 0 : index
    %c0_7 = arith.constant 0 : index
    %24 = vector.load %arg2[%c1, %c0_6, %c0_7] : memref<3x8x25xf32, #tpu.memory_space<vmem>>, vector<1x8x25xf32>
    %25 = vector.shape_cast %24 : vector<1x8x25xf32> to vector<8x25xf32>
    %c2 = arith.constant 2 : index
    %c0_8 = arith.constant 0 : index
    %c0_9 = arith.constant 0 : index
    %26 = vector.load %arg2[%c2, %c0_8, %c0_9] : memref<3x8x25xf32, #tpu.memory_space<vmem>>, vector<1x8x25xf32>
    %27 = vector.shape_cast %26 : vector<1x8x25xf32> to vector<8x25xf32>
    %c0_10 = arith.constant 0 : index
    %c0_11 = arith.constant 0 : index
    %c0_12 = arith.constant 0 : index
    %28 = vector.load %arg3[%c0_10, %c0_11, %c0_12] : memref<3x8x25xf32, #tpu.memory_space<vmem>>, vector<1x8x25xf32>
    %29 = vector.shape_cast %28 : vector<1x8x25xf32> to vector<8x25xf32>
    %c1_13 = arith.constant 1 : index
    %c0_14 = arith.constant 0 : index
    %c0_15 = arith.constant 0 : index
    %30 = vector.load %arg3[%c1_13, %c0_14, %c0_15] : memref<3x8x25xf32, #tpu.memory_space<vmem>>, vector<1x8x25xf32>
    %31 = vector.shape_cast %30 : vector<1x8x25xf32> to vector<8x25xf32>
    %c2_16 = arith.constant 2 : index
    %c0_17 = arith.constant 0 : index
    %c0_18 = arith.constant 0 : index
    %32 = vector.load %arg3[%c2_16, %c0_17, %c0_18] : memref<3x8x25xf32, #tpu.memory_space<vmem>>, vector<1x8x25xf32>
    %33 = vector.shape_cast %32 : vector<1x8x25xf32> to vector<8x25xf32>
    %c0_19 = arith.constant 0 : index
    %c0_20 = arith.constant 0 : index
    %c0_21 = arith.constant 0 : index
    %34 = vector.load %arg1[%c0_19, %c0_20, %c0_21] : memref<1x8x256xf32, #tpu.memory_space<vmem>>, vector<1x8x256xf32>
    %35 = vector.shape_cast %34 : vector<1x8x256xf32> to vector<8x256xf32>
    %c1_i32_22 = arith.constant 1 : i32
    %36 = tpu.dynamic_rotate %35 by %c1_i32_22 dim 1 : vector<8x256xf32>, i32 -> vector<8x256xf32>
    %c241_i32 = arith.constant 241 : i32
    %37 = tpu.dynamic_rotate %35 by %c241_i32 dim 1 : vector<8x256xf32>, i32 -> vector<8x256xf32>
    %38 = vector.shape_cast %18 : vector<1x256xi1> to vector<1x256xi1>
    %39 = vector.broadcast %38 : vector<1x256xi1> to vector<8x256xi1>
    %40 = arith.select %39, %36, %37 : vector<8x256xi1>, vector<8x256xf32>
    %c255_i32 = arith.constant 255 : i32
    %41 = tpu.dynamic_rotate %35 by %c255_i32 dim 1 : vector<8x256xf32>, i32 -> vector<8x256xf32>
    %c15_i32_23 = arith.constant 15 : i32
    %42 = tpu.dynamic_rotate %35 by %c15_i32_23 dim 1 : vector<8x256xf32>, i32 -> vector<8x256xf32>
    %43 = vector.shape_cast %20 : vector<1x256xi1> to vector<1x256xi1>
    %44 = vector.broadcast %43 : vector<1x256xi1> to vector<8x256xi1>
    %45 = arith.select %44, %41, %42 : vector<8x256xi1>, vector<8x256xf32>
    %46 = tpu.concatenate %40, %35, %45, %21 in 0 : vector<8x256xf32>, vector<8x256xf32>, vector<8x256xf32>, vector<1x256xf32> -> vector<25x256xf32>
    %cst_24 = arith.constant dense<0.000000e+00> : vector<8x256xf32>
    %47 = tpu.matmul %23, %46, %cst_24 {dimension_numbers = #tpu.dot_dimension_numbers<[1], [0], [0], [1], [0, 0, 1, 1], [], []>} : vector<8x25xf32>, vector<25x256xf32>, vector<8x256xf32> -> vector<8x256xf32>
    %cst_25 = arith.constant dense<0.000000e+00> : vector<8x256xf32>
    %48 = tpu.matmul %25, %46, %cst_25 {dimension_numbers = #tpu.dot_dimension_numbers<[1], [0], [0], [1], [0, 0, 1, 1], [], []>} : vector<8x25xf32>, vector<25x256xf32>, vector<8x256xf32> -> vector<8x256xf32>
    %cst_26 = arith.constant dense<0.000000e+00> : vector<8x256xf32>
    %49 = tpu.matmul %27, %46, %cst_26 {dimension_numbers = #tpu.dot_dimension_numbers<[1], [0], [0], [1], [0, 0, 1, 1], [], []>} : vector<8x25xf32>, vector<25x256xf32>, vector<8x256xf32> -> vector<8x256xf32>
    %c16_i32_27 = arith.constant 16 : i32
    %50 = tpu.dynamic_rotate %47 by %c16_i32_27 dim 1 : vector<8x256xf32>, i32 -> vector<8x256xf32>
    %51 = arith.addf %50, %48 : vector<8x256xf32>
    %c240_i32 = arith.constant 240 : i32
    %52 = tpu.dynamic_rotate %49 by %c240_i32 dim 1 : vector<8x256xf32>, i32 -> vector<8x256xf32>
    %53 = arith.addf %51, %52 : vector<8x256xf32>
    %c1_i32_28 = arith.constant 1 : i32
    %54 = tpu.dynamic_rotate %53 by %c1_i32_28 dim 1 : vector<8x256xf32>, i32 -> vector<8x256xf32>
    %c241_i32_29 = arith.constant 241 : i32
    %55 = tpu.dynamic_rotate %53 by %c241_i32_29 dim 1 : vector<8x256xf32>, i32 -> vector<8x256xf32>
    %56 = vector.shape_cast %18 : vector<1x256xi1> to vector<1x256xi1>
    %57 = vector.broadcast %56 : vector<1x256xi1> to vector<8x256xi1>
    %58 = arith.select %57, %54, %55 : vector<8x256xi1>, vector<8x256xf32>
    %c255_i32_30 = arith.constant 255 : i32
    %59 = tpu.dynamic_rotate %53 by %c255_i32_30 dim 1 : vector<8x256xf32>, i32 -> vector<8x256xf32>
    %c15_i32_31 = arith.constant 15 : i32
    %60 = tpu.dynamic_rotate %53 by %c15_i32_31 dim 1 : vector<8x256xf32>, i32 -> vector<8x256xf32>
    %61 = vector.shape_cast %20 : vector<1x256xi1> to vector<1x256xi1>
    %62 = vector.broadcast %61 : vector<1x256xi1> to vector<8x256xi1>
    %63 = arith.select %62, %59, %60 : vector<8x256xi1>, vector<8x256xf32>
    %64 = tpu.concatenate %58, %53, %63, %21 in 0 : vector<8x256xf32>, vector<8x256xf32>, vector<8x256xf32>, vector<1x256xf32> -> vector<25x256xf32>
    %cst_32 = arith.constant dense<0.000000e+00> : vector<8x256xf32>
    %65 = tpu.matmul %29, %64, %cst_32 {dimension_numbers = #tpu.dot_dimension_numbers<[1], [0], [0], [1], [0, 0, 1, 1], [], []>} : vector<8x25xf32>, vector<25x256xf32>, vector<8x256xf32> -> vector<8x256xf32>
    %cst_33 = arith.constant dense<0.000000e+00> : vector<8x256xf32>
    %66 = tpu.matmul %31, %64, %cst_33 {dimension_numbers = #tpu.dot_dimension_numbers<[1], [0], [0], [1], [0, 0, 1, 1], [], []>} : vector<8x25xf32>, vector<25x256xf32>, vector<8x256xf32> -> vector<8x256xf32>
    %cst_34 = arith.constant dense<0.000000e+00> : vector<8x256xf32>
    %67 = tpu.matmul %33, %64, %cst_34 {dimension_numbers = #tpu.dot_dimension_numbers<[1], [0], [0], [1], [0, 0, 1, 1], [], []>} : vector<8x25xf32>, vector<25x256xf32>, vector<8x256xf32> -> vector<8x256xf32>
    %c16_i32_35 = arith.constant 16 : i32
    %68 = tpu.dynamic_rotate %65 by %c16_i32_35 dim 1 : vector<8x256xf32>, i32 -> vector<8x256xf32>
    %69 = arith.addf %68, %66 : vector<8x256xf32>
    %c240_i32_36 = arith.constant 240 : i32
    %70 = tpu.dynamic_rotate %67 by %c240_i32_36 dim 1 : vector<8x256xf32>, i32 -> vector<8x256xf32>
    %71 = arith.addf %69, %70 : vector<8x256xf32>
    %c0_37 = arith.constant 0 : index
    %c0_38 = arith.constant 0 : index
    %c0_39 = arith.constant 0 : index
    %72 = vector.load %arg4[%c0_37, %c0_38, %c0_39] : memref<1x8x256xf32, #tpu.memory_space<vmem>>, vector<1x8x256xf32>
    %73 = vector.shape_cast %72 : vector<1x8x256xf32> to vector<8x256xf32>
    %74 = vector.shape_cast %71 : vector<8x256xf32> to vector<1x8x256xf32>
    tpu.vector_store %arg4[%c0_37, %c0_38, %c0_39], %74 {strides = array<i32>} : memref<1x8x256xf32, #tpu.memory_space<vmem>>, vector<1x8x256xf32>,
    return
  }
  func.func @transform_0(%arg0: i32) -> (i32, i32, i32) {
    %c0_i32 = arith.constant 0 : i32
    %c0_i32_0 = arith.constant 0 : i32
    %c0_i32_1 = arith.constant 0 : i32
    return %arg0, %c0_i32, %c0_i32_0 : i32, i32, i32
  }
  func.func @transform_1(%arg0: i32) -> (i32, i32, i32) {
    %c0_i32 = arith.constant 0 : i32
    %c0_i32_0 = arith.constant 0 : i32
    %c0_i32_1 = arith.constant 0 : i32
    %c0_i32_2 = arith.constant 0 : i32
    return %c0_i32, %c0_i32_0, %c0_i32_1 : i32, i32, i32
  }
  func.func @transform_2(%arg0: i32) -> (i32, i32, i32) {
    %c0_i32 = arith.constant 0 : i32
    %c0_i32_0 = arith.constant 0 : i32
    %c0_i32_1 = arith.constant 0 : i32
    %c0_i32_2 = arith.constant 0 : i32
    return %c0_i32, %c0_i32_0, %c0_i32_1 : i32, i32, i32
  }
  func.func @transform_3(%arg0: i32) -> (i32, i32, i32) {
    %c0_i32 = arith.constant 0 : i32
    %c0_i32_0 = arith.constant 0 : i32
    %c0_i32_1 = arith.constant 0 : i32
    return %arg0, %c0_i32, %c0_i32_0 : i32, i32, i32
  }
}

</mosaic_0001>

<bundles_post_ra>
// kernel: tpu_custom_call.1
= control target key start
LH: loop header
LB: loop body
LE: loop exit
PB: predicated region body
PF: predicated region fallthrough
CT: control target
= control target key end

     0   :  { %8 = vsyncpa [#allocation3], 0  ;;  %s1709_s0 = inlined_call_operand.hbm [shape: f32[2,8,256], index: 0, kind: input, shape index: {}]   ;;  %s1710_s1 = inlined_call_operand.hbm [shape: f32[3,8,25], index: 1, kind: input, shape index: {}]   ;;  %s1711_s2 = inlined_call_operand.hbm [shape: f32[3,8,25], index: 2, kind: input, shape index: {}]   ;;  %s1712_s3 = inlined_call_operand.hbm [shape: f32[2,8,256], index: 3, kind: output, shape index: {}]  }
   0x1   :  { %10 = vsyncpa [#allocation3 + $0x1], 0 }
   0x2   :  { %11 = vsyncpa [#allocation6], 0 }
   0x3   :  { %12 = vsyncpa [#allocation4], 0 }
   0x4   :  { %14 = vsyncpa [#allocation4 + $0x1], 0  ;;  %s1325_s12 = smov 0   ;;  %s1327_s13 = smov 0  }
   0x5   :  { %s1329_s14 = smov 0   ;;  %s1331_s15 = smov 0  }
   0x6 LB: > { %s1346_s16 = sadd.s32 4294967295, %s1288_s15   ;;  %s916_s17 = sadd.s32 4294967294, %s1288_s15   ;;  %s1288_s15 = sphi %s1331_s15, %s1742_s15   ;;  %s1284_s14 = sphi %s1329_s14, %s1741_s14   ;;  %s1280_s13 = sphi %s1327_s13, %s1740_s13   ;;  %s1276_s12 = sphi %s1325_s12, %s1739_s12  }
   0x7   : > { %p40_p0 = scmp.ne.s32.totalorder %s1280_s13, %s1276_s12  ;;  %p1713_p1 = scmp.eq.s32.totalorder %s1346_s16, 0 }
   0x8   : > { %p112_p3 = scmp.eq.s32.totalorder %s916_s17, 1  ;;  %p917_p5 = scmp.ge.s32.totalorder %s1288_s15, 1 }
   0x9   : > { %p1355_p4 = por %p1713_p1, %p40_p0  ;;  %p119_p7 = scmp.lt.s32.totalorder %s1288_s15, 3 }
   0xa   : > { %p1360_p6 = por %p112_p3, %p40_p0  ;;  %s1290_s21 = smov [#allocation5]  }
   0xb   : > { %s1716_s18 = scalar_select %p1355_p4, 1, 0 }
   0xc   : > { %s1717_s19 = scalar_select %p1360_p6, 1, 0 }
   0xd   : > { %p1365_p8 = pnand %p917_p5, %p119_p7  ;;  %s131_s22 = sshll.u32 %s1290_s21, 4  ;;  %s1369_s22 = int_to_ptr.vmem [resolvable:$true] %s131_s22 }
   0xe   : > { %s1291_s24 = smov [#allocation7]   ;;  %s1132_s28 = scalar_lea.hbm %s1710_s1, 384 }
   0xf   : > { %p1026_p9 = pneg %p1365_p8  ;;  %s144_s25 = sshll.u32 %s1291_s24, 4  ;;  %s1380_s25 = int_to_ptr.vmem [resolvable:$true] %s144_s25 }
  0x10   : > { %p1133_p12 = scmp.ne.s32.totalorder %s1710_s1, %s1132_s28  ;;  %p1139_p5 = scmp.lt.u32.totalorder %s1132_s28, %s1710_s1 }
  0x11   : > { %p1376_p11 = pnand %p1026_p9, %p1713_p1 }
  0x13   : > { %p1134_p13 = pneg %p1376_p11 }
  0x15   : > { %p1135_p0 = pnand %p1134_p13, %p1133_p12 }
  0x17   : > { %p1136_p3 = pneg %p1135_p0 }
  0x19   : > { %p1141_p7 = pnand %p1139_p5, %p1136_p3 }
  0x1b   : > { %1144 = shalt.err (!%p1141_p7)
}
  0x1c   : > { %s1145_s6 = scalar_lea.vmem %s1369_s22, 384  ;;  %p1153_p2 = scmp.lt.s32.totalorder %s1369_s22, %s1369_s22 }
  0x1d   : > { %p1146_p9 = scmp.ne.s32.totalorder %s1369_s22, %s1145_s6  ;;  %p1154_p12 = scmp.lt.s32.totalorder %s1145_s6, %s1145_s6 }
  0x1f   : > { %p1148_p10 = pnand %p1146_p9, %p1134_p13  ;;  %p1155_p0 = por %p1154_p12, %p1153_p2 }
  0x21   : > { %p1149_p1 = pneg %p1148_p10 }
  0x23   : > { %p1156_p6 = pnand %p1155_p0, %p1149_p1 }
  0x25   : > { %1159 = shalt.err (!%p1156_p6)
}
  0x26   : > { %s1292_s7 = smov 128   ;;  %s1293_s8 = smov 8  }
  0x27   : > { %1029 = dma.hbm_to_vmem [thread:$0]  (!%p1376_p11), %s1710_s1, 384, %s1369_s22, [#allocation6], %s1292_s7, %s1292_s7, %s1293_s8  }
  0x28   : > { %s1160_s21 = scalar_lea.hbm %s1711_s2, 384 }
  0x29   : > { %p1161_p2 = scmp.ne.s32.totalorder %s1711_s2, %s1160_s21  ;;  %p1167_p10 = scmp.lt.u32.totalorder %s1160_s21, %s1711_s2 }
  0x2b   : > { %p1163_p1 = pnand %p1161_p2, %p1134_p13 }
  0x2d   : > { %p1164_p6 = pneg %p1163_p1 }
  0x2f   : > { %p1169_p3 = pnand %p1167_p10, %p1164_p6 }
  0x31   : > { %1172 = shalt.err (!%p1169_p3)
}
  0x32   : > { %s1173_s22 = scalar_lea.vmem %s1380_s25, 384  ;;  %p1181_p12 = scmp.lt.s32.totalorder %s1380_s25, %s1380_s25 }
  0x33   : > { %p1174_p5 = scmp.ne.s32.totalorder %s1380_s25, %s1173_s22  ;;  %p1182_p0 = scmp.lt.s32.totalorder %s1173_s22, %s1173_s22 }
  0x35   : > { %p1176_p7 = pnand %p1174_p5, %p1134_p13  ;;  %p1183_p2 = por %p1182_p0, %p1181_p12 }
  0x37   : > { %p1177_p9 = pneg %p1176_p7 }
  0x39   : > { %p1184_p1 = pnand %p1183_p2, %p1177_p9 }
  0x3b   : > { %1187 = shalt.err (!%p1184_p1)
}
  0x3c   : > { %1032 = dma.hbm_to_vmem [thread:$0]  (!%p1376_p11), %s1711_s2, 384, %s1380_s25, [#allocation6], %s1292_s7, %s1292_s7, %s1293_s8  }
  0x3d   : > { %s1435_s4 = sadd.s32 1, %s1288_s15   ;;  %s27_s23 = sadd.s32 1, %s1284_s14 }
  0x3e   : > { %s24_s5 = ssub.s32 %s1288_s15, %s1435_s4  ;;  %p34_p13 = scmp.ne.s32.totalorder %s1284_s14, %s1280_s13 }
  0x3f   : > { %p25_p6 = scmp.eq.s32.totalorder %s24_s5, 0  ;;  %p35_p10 = scmp.eq.s32.totalorder %s1288_s15, 0 }
  0x40   : > { %p1720_p3 = scmp.eq.s32.totalorder %s1346_s16, 1  ;;  %p1043_p7 = scmp.lt.s32.totalorder %s1288_s15, 2 }
  0x41   : > { %s1451_s9 = scalar_select %p25_p6, %s1284_s14, %s27_s23  }
  0x42   : > { %p1445_p5 = por %p1720_p3, %p34_p13  ;;  %p36_p9 = por %p35_p10, %p34_p13 }
  0x43   : > { %s158_s10 = sand.u32 1, %s1284_s14   ;;  %s952_s25 = sshll.u32 %s1288_s15, 8 }
  0x44   : > { %s1721_s6 = scalar_select %p1445_p5, 1, 0 }
  0x45   : > { %s921_s11 = sshll.u32 %s158_s10, 4  ;;  %s1458_s17 = scalar_lea.hbm %s1709_s0, %s952_s25 }
  0x46   : > { %s162_s21 = scalar_lea.vmem [#allocation2], %s921_s11  ;;  %p1462_p11 = pnand %p1043_p7, %p36_p9 }
  0x47   : > { %s170_s24 = sshll.u32 %s162_s21, 4  ;;  %s159_s27 = scalar_lea.sflag [#allocation3], %s158_s10  ;;  %s1460_s24 = int_to_ptr.vmem [resolvable:$true] %s170_s24 }
  0x48   : > { %s1188_s28 = scalar_lea.hbm %s1458_s17, 256  ;;  %p1190_p0 = pneg %p1462_p11 }
  0x49   : > { %p1189_p12 = scmp.ne.s32.totalorder %s1458_s17, %s1188_s28  ;;  %s1193_s30 = scalar_lea.hbm %s1709_s0, 512 }
  0x4a   : > { %p1194_p13 = scmp.lt.u32.totalorder %s1458_s17, %s1709_s0  ;;  %p1195_p6 = scmp.lt.u32.totalorder %s1193_s30, %s1188_s28 }
  0x4b   : > { %p1191_p2 = pnand %p1190_p0, %p1189_p12  ;;  %p1197_p3 = scmp.lt.u32.totalorder %s1188_s28, %s1458_s17 }
  0x4c   : > { %p1196_p10 = por %p1195_p6, %p1194_p13 }
  0x4d   : > { %p1192_p1 = pneg %p1191_p2 }
  0x4e   : > { %p1198_p7 = por %p1197_p3, %p1196_p10 }
  0x50   : > { %p1199_p9 = pnand %p1198_p7, %p1192_p1 }
  0x52   : > { %1202 = shalt.err (!%p1199_p9)
}
  0x53   : > { %s1203_s10 = scalar_lea.vmem %s1460_s24, 256  ;;  %s1294_s11 = smov [#allocation2]  }
  0x54   : > { %p1204_p12 = scmp.ne.s32.totalorder %s1460_s24, %s1203_s10  ;;  %s1208_s25 = sshll.u32 %s1294_s11, 4  ;;  %s1209_s25 = int_to_ptr.vmem [resolvable:$false] %s1208_s25 }
  0x55   : > { %s1210_s7 = scalar_lea.vmem %s1209_s25, 512  ;;  %p1211_p4 = scmp.lt.s32.totalorder %s1460_s24, %s1209_s25 }
  0x56   : > { %p1206_p2 = pnand %p1204_p12, %p1190_p0  ;;  %p1212_p13 = scmp.lt.s32.totalorder %s1210_s7, %s1203_s10 }
  0x58   : > { %p1207_p5 = pneg %p1206_p2  ;;  %p1213_p6 = por %p1212_p13, %p1211_p4 }
  0x5a   : > { %p1214_p10 = pnand %p1213_p6, %p1207_p5 }
  0x5c   : > { %1217 = shalt.err (!%p1214_p10)
}
  0x5d   : > { %1036 = dma.hbm_to_vmem [thread:$0]  (!%p1462_p11), %s1458_s17, 256, %s1460_s24, %s159_s27  }
  0x5e   : > { %179 = sbr.rel (%p1365_p8) target bundleno = 1065 (0x429), region = 32  ;;  %s1494_s8 = sand.u32 (!%p1365_p8), 1, %s1280_s13  }
  0x5f   : > { %s925_s21 = sshll.u32 (!%p1365_p8), %s1494_s8, 4  ;;  %s182_s28 = scalar_lea.sflag (!%p1365_p8), [#allocation3], %s1494_s8 }
  0x60   : > { %s185_s22 = scalar_lea.vmem (!%p1365_p8), [#allocation2], %s925_s21  ;;  %p1723_p4 = scmp.ne.s32.totalorder (!%p1365_p8), %s1716_s18, 0 }
  0x65   : > { %1263 = dma.done.wait (%p1723_p4), %s182_s28, 256  }
  0x66   : > { %1265 = vsyncadd (%p1723_p4), %s182_s28, 4294967040  ;;  %p1724_p5 = scmp.eq.s32.totalorder %s1346_s16, 0 }
  0x68   : > { %1267 = dma.done.wait (%p1724_p5), [#allocation6], 768   ;;  %p1725_p8 = pmov %p1724_p5 }
  0x69   : > { %v257_v0 = vld [vmem:[%s185_s22] sm:$0xff]  ;;  %v258_v1 = vld [vmem:[%s185_s22 + $0x8] sm:$0xff]  ;;  %s1295_s20 = smov 127   ;;  %s1296_s17 = smov 1   ;;  %v1299_v3 = vmov 0.0   ;;  %v216_v4 = vlaneseq  ;;  %vm303_vm7 = vcmask 1040384  }
  0x6a   : > { %1269 = vsyncadd (%p1725_p8), [#allocation6], 4294966528  ;;  %v1102_v2 = vpack.i.bf16 %v258_v1, %v257_v0  ;;  %s1297_s24 = smov 15   ;;  %s1298_s18 = smov 113   ;;  %371 = vmatprep.mubr.f32.mxu0 %v1299_v3  ;;  %445 = vmatprep.mubr.f32.mxu1 %v1299_v3  ;;  %vm1300_vm9 = vmmov 1   ;;  %v1301_v39 = vmov 1.0  }
  0x6b   : > { %v1514_v5 = vand.u32 127, %v216_v4  ;;  %vm1561_vm10 = vmpackc.low %vm303_vm7, %vm1300_vm9  ;;  %v247_v43 = vld [vmem:[#allocation5] sm:$0xff]  ;;  %vm299_vm11 = vcmask 203776   ;;  %v249_v44 = vld [vmem:[#allocation5 + $0x8] sm:$0xff]  ;;  %s1302_s26 = smov 16   ;;  %s1303_s27 = smov 112  }
  0x6c   : > { %1103 = vrot.lane.b32.xlu1 %v1102_v2, %s1295_s20  ;;  %1093 = vrot.lane.b32.xlu0 %v1102_v2, %s1296_s17  ;;  %v251_v45 = vld [vmem:[#allocation5 + $0x10] sm:$0xff]  ;;  %v252_v20 = vld [vmem:[#allocation7] sm:$0xff]  ;;  %v254_v27 = vld [vmem:[#allocation7 + $0x8] sm:$0xff]  ;;  %s953_s29 = sshll.u32 %s1346_s16, 8  ;;  %s215_s30 = scalar_lea.vmem [#allocation8], %s925_s21 }
  0x6d   : > { %v218_v6 = vadd.s32 128, %v1514_v5  ;;  %v223_v7 = vand.u32 15, %v1514_v5  ;;  %vm283_vm0 = vcmp.lt.s32.totalorder %v1514_v5, 127  ;;  %vm263_vm1 = vcmp.lt.s32.totalorder %v1514_v5, 1  ;;  %s827_s23 = sshll.u32 %s215_s30, 4  ;;  %s1665_s11 = scalar_lea.hbm %s1712_s3, %s953_s29  ;;  %s1667_s23 = int_to_ptr.vmem [resolvable:$true] %s827_s23 }
  0x6e   : > { %vm290_vm2 = vcmp.lt.s32.totalorder %v1514_v5, 15  ;;  %vm270_vm3 = vcmp.lt.s32.totalorder %v1514_v5, 113  ;;  %vm530_vm12 = vcmp.lt.s32.totalorder %v1514_v5, 16  ;;  %vm539_vm13 = vcmp.lt.s32.totalorder %v1514_v5, 112  ;;  %s813_s16 = scalar_lea.sflag [#allocation4], %s1494_s8  ;;  %s1218_s25 = scalar_lea.vmem %s1667_s23, 256 }
  0x6f   : > { %v230_v10 = vand.u32 15, %v218_v6  ;;  %vm1522_vm4 = vcmp.ge.s32.totalorder %v223_v7, 1  ;;  %vm1540_vm8 = vcmp.lt.s32.totalorder %v223_v7, 15  ;;  %p1219_p11 = scmp.ne.s32.totalorder %s1667_s23, %s1218_s25  ;;  %p1736_p0 = scmp.ne.s32.totalorder %s1721_s6, 0 }
  0x70   : > { %1108 = vrot.lane.b32.xlu1 %v1102_v2, %s1297_s24  ;;  %1098 = vrot.lane.b32.xlu0 %v1102_v2, %s1298_s18  ;;  %s1304_s7 = smov [#allocation8]  }
  0x71   : > { %vm1528_vm5 = vcmp.ge.s32.totalorder %v230_v10, 1  ;;  %vm1532_vm6 = vcmp.lt.s32.totalorder %v230_v10, 15  ;;  %p1220_p1 = pnand %p1219_p11, %p1736_p0  ;;  %s1222_s21 = sshll.u32 %s1304_s7, 4  ;;  %s1223_s21 = int_to_ptr.vmem [resolvable:$false] %s1222_s21 }
  0x72   : > { %s1224_s28 = scalar_lea.vmem %s1223_s21, 512  ;;  %p1225_p7 = scmp.lt.s32.totalorder %s1667_s23, %s1223_s21 }
  0x73   : > { %p1221_p3 = pneg %p1220_p1  ;;  %p1226_p9 = scmp.lt.s32.totalorder %s1224_s28, %s1218_s25 }
  0x75   : > { %p1227_p12 = por %p1226_p9, %p1225_p7 }
  0x77   : > { %p1228_p2 = pnand %p1227_p12, %p1221_p3 }
  0xde   : > { %v1104_v8 = vpop.permute.xlu1 %1103  ;;  %v1094_v9 = vpop.permute.xlu0 %1093 }
  0xdf   : > { %v1106_v11 = vunpack.i.h.bf16 %v1104_v8  ;;  %v1105_v12 = vunpack.i.l.bf16 %v1104_v8  ;;  %v1096_v13 = vunpack.i.h.bf16 %v1094_v9  ;;  %v1095_v14 = vunpack.i.l.bf16 %v1094_v9 }
  0xe1   : > { %v285_v16 = vsel %vm283_vm0, %v1106_v11, %v1105_v12  ;;  %v284_v25 = vsel %vm283_vm0, %v1105_v12, %v1106_v11  ;;  %v264_v26 = vsel %vm263_vm1, %v1095_v14, %v1096_v13  ;;  %v265_v28 = vsel %vm263_vm1, %v1096_v13, %v1095_v14 }
  0xe2   : > { %v1109_v17 = vpop.permute.xlu1 %1108  ;;  %v1099_v18 = vpop.permute.xlu0 %1098 }
  0xe3   : > { %v1111_v21 = vunpack.i.h.bf16 %v1109_v17  ;;  %v1110_v22 = vunpack.i.l.bf16 %v1109_v17  ;;  %v1101_v23 = vunpack.i.h.bf16 %v1099_v18  ;;  %v1100_v24 = vunpack.i.l.bf16 %v1099_v18 }
  0xe5   : > { %v291_v29 = vsel %vm290_vm2, %v1110_v22, %v1111_v21  ;;  %v271_v30 = vsel %vm270_vm3, %v1100_v24, %v1101_v23  ;;  %v272_v31 = vsel %vm270_vm3, %v1101_v23, %v1100_v24  ;;  %v292_v32 = vsel %vm290_vm2, %v1111_v21, %v1110_v22 }
  0xe6   : > { %v278_v33 = vsel %vm1528_vm5, %v264_v26, %v272_v31  ;;  %v277_v34 = vsel %vm1522_vm4, %v265_v28, %v271_v30  ;;  %v298_v35 = vsel %vm1532_vm6, %v285_v16, %v291_v29  ;;  %v297_v41 = vsel %vm1540_vm8, %v284_v25, %v292_v32 }
  0xe7   : > { %v954_v36 = vpack.c.bf16 %v258_v1, %v278_v33  ;;  %v956_v37 = vpack.c.bf16 %v257_v0, %v277_v34  ;;  %v958_v40 = vpack.c.bf16 %v1301_v39, %v298_v35  ;;  %v961_v42 = vpack.c.bf16 %v1301_v39, %v297_v41  ;;  %v256_v33 = vld [vmem:[#allocation7 + $0x10] sm:$0xff] }
  0xe9   : > { %955 = vmatprep.subr.bf16.mxu0 %v954_v36  ;;  %965 = vmatprep.subr.bf16.mxu1 %v954_v36 }
  0xea   : > { %957 = vmatpush1.bf16.msra.mxu0 %v956_v37  ;;  %967 = vmatpush1.bf16.msra.mxu1 %v956_v37 }
  0xeb   : > { %960 = vmatprep.subr.msk.bf16.mxu0 %vm1561_vm10, %v958_v40  ;;  %970 = vmatprep.subr.msk.bf16.mxu1 %vm1561_vm10, %v958_v40 }
  0xee   : > { %963 = vmatpush1.bf16.msk.msra.mxu0 %vm1561_vm10, %v961_v42  ;;  %973 = vmatpush1.bf16.msk.msra.mxu1 %vm1561_vm10, %v961_v42 }
  0xef   : > { %975 = vmatprep.subr.bf16.mxu0 %v954_v36 }
  0xf1   : > { %931 = vmatmul.mubr.msk.f32.vlgmr.msra.gmra.mrb[0].mxu0 %vm299_vm11, %v247_v43  ;;  %934 = vmatmul.mubr.msk.f32.vlgmr.msra.gmra.mrb[0].mxu1 %vm299_vm11, %v249_v44 }
  0xf2   : > { %977 = vmatpush1.bf16.msra.mxu0 %v956_v37  ;;  %519 = vmatprep.mubr.f32.mxu0 %v1299_v3 }
  0xf3   : > { %980 = vmatprep.subr.msk.bf16.mxu0 %vm1561_vm10, %v958_v40  ;;  %639 = vmatprep.mubr.f32.mxu1 %v1299_v3 }
  0xf6   : > { %983 = vmatpush1.bf16.msk.msra.mxu0 %vm1561_vm10, %v961_v42 }
  0xf9   : > { %937 = vmatmul.mubr.msk.f32.vlgmr.msra.gmra.mrb[2].mxu0 %vm299_vm11, %v251_v45 }
  0xfa   : > { %713 = vmatprep.mubr.f32.mxu0 %v1299_v3 }
 0x1c4   : > { %v373_v46 = vpop.f32.mrb[0].mxu0  ;;  %v447_v47 = vpop.f32.mrb[0].mxu1 }
 0x1c5   : > { %v375_v48 = vpop.f32.mrb[1].mxu0  ;;  %526 = vrot.lane.b32.xlu0 %v373_v46, %s1302_s26  ;;  %v449_v49 = vpop.f32.mrb[1].mxu1 }
 0x1c6   : > { %528 = vrot.lane.b32.xlu1 %v375_v48, %s1302_s26 }
 0x1cc   : > { %v521_v50 = vpop.f32.mrb[2].mxu0 }
 0x1cd   : > { %535 = vrot.lane.b32.xlu0 %v521_v50, %s1303_s27  ;;  %v523_v51 = vpop.f32.mrb[3].mxu0 }
 0x1ce   : > { %537 = vrot.lane.b32.xlu1 %v523_v51, %s1303_s27 }
 0x237   : > { %v527_v52 = vpop.permute.xlu0 %526 }
 0x238   : > { %v529_v53 = vpop.permute.xlu1 %528 }
 0x239   : > { %v532_v54 = vsel %vm530_vm12, %v529_v53, %v527_v52  ;;  %v531_v55 = vsel %vm530_vm12, %v527_v52, %v529_v53 }
 0x23a   : > { %v533_v57 = vadd.f32 %v532_v54, %v447_v47  ;;  %v534_v58 = vadd.f32 %v531_v55, %v449_v49 }
 0x23f   : > { %v536_v56 = vpop.permute.xlu0 %535 }
 0x240   : > { %v538_v59 = vpop.permute.xlu1 %537 }
 0x241   : > { %v540_v60 = vsel %vm539_vm13, %v536_v56, %v538_v59  ;;  %v541_v61 = vsel %vm539_vm13, %v538_v59, %v536_v56 }
 0x242   : > { %v542_v62 = vadd.f32 %v540_v60, %v533_v57  ;;  %v543_v63 = vadd.f32 %v541_v61, %v534_v58 }
 0x244   : > { %v1117_v0 = vpack.i.bf16 %v543_v63, %v542_v62 }
 0x246   : > { %1118 = vrot.lane.b32.xlu1 %v1117_v0, %s1298_s18  ;;  %1113 = vrot.lane.b32.xlu0 %v1117_v0, %s1296_s17 }
 0x24a   : > { %1128 = vrot.lane.b32.xlu1 %v1117_v0, %s1297_s24  ;;  %1123 = vrot.lane.b32.xlu0 %v1117_v0, %s1295_s20 }
 0x2b8   : > { %v1119_v1 = vpop.permute.xlu1 %1118  ;;  %v1114_v2 = vpop.permute.xlu0 %1113 }
 0x2b9   : > { %v1121_v4 = vunpack.i.h.bf16 %v1119_v1  ;;  %v1120_v6 = vunpack.i.l.bf16 %v1119_v1  ;;  %v1116_v7 = vunpack.i.h.bf16 %v1114_v2  ;;  %v1115_v8 = vunpack.i.l.bf16 %v1114_v2 }
 0x2bb   : > { %v554_v9 = vsel %vm270_vm3, %v1120_v6, %v1121_v4  ;;  %v555_v10 = vsel %vm270_vm3, %v1121_v4, %v1120_v6  ;;  %v548_v11 = vsel %vm263_vm1, %v1115_v8, %v1116_v7  ;;  %v549_v12 = vsel %vm263_vm1, %v1116_v7, %v1115_v8 }
 0x2bc   : > { %v1129_v13 = vpop.permute.xlu1 %1128  ;;  %v1124_v14 = vpop.permute.xlu0 %1123  ;;  %v557_v16 = vsel %vm1528_vm5, %v548_v11, %v555_v10  ;;  %v556_v17 = vsel %vm1522_vm4, %v549_v12, %v554_v9 }
 0x2bd   : > { %v1131_v18 = vunpack.i.h.bf16 %v1129_v13  ;;  %v1130_v21 = vunpack.i.l.bf16 %v1129_v13  ;;  %v1126_v22 = vunpack.i.h.bf16 %v1124_v14  ;;  %v1125_v23 = vunpack.i.l.bf16 %v1124_v14 }
 0x2be   : > { %v984_v24 = vpack.c.bf16 %v543_v63, %v557_v16  ;;  %v986_v25 = vpack.c.bf16 %v542_v62, %v556_v17 }
 0x2bf   : > { %v568_v26 = vsel %vm290_vm2, %v1130_v21, %v1131_v18  ;;  %v569_v28 = vsel %vm290_vm2, %v1131_v18, %v1130_v21  ;;  %v562_v29 = vsel %vm283_vm0, %v1125_v23, %v1126_v22  ;;  %v563_v19 = vsel %vm283_vm0, %v1126_v22, %v1125_v23 }
 0x2c0   : > { %v570_v15 = vsel %vm1540_vm8, %v562_v29, %v569_v28  ;;  %985 = vmatprep.subr.bf16.mxu1 %v984_v24  ;;  %995 = vmatprep.subr.bf16.mxu0 %v984_v24  ;;  %v571_v30 = vsel %vm1532_vm6, %v563_v19, %v568_v26 }
 0x2c1   : > { %v991_v31 = vpack.c.bf16 %v1301_v39, %v570_v15  ;;  %987 = vmatpush1.bf16.msra.mxu1 %v986_v25  ;;  %997 = vmatpush1.bf16.msra.mxu0 %v986_v25  ;;  %v988_v32 = vpack.c.bf16 %v1301_v39, %v571_v30 }
 0x2c3   : > { %990 = vmatprep.subr.msk.bf16.mxu1 %vm1561_vm10, %v988_v32  ;;  %1000 = vmatprep.subr.msk.bf16.mxu0 %vm1561_vm10, %v988_v32 }
 0x2c5   : > { %993 = vmatpush1.bf16.msk.msra.mxu1 %vm1561_vm10, %v991_v31  ;;  %1003 = vmatpush1.bf16.msk.msra.mxu0 %vm1561_vm10, %v991_v31 }
 0x2c6   : > { %1005 = vmatprep.subr.bf16.mxu1 %v984_v24 }
 0x2c8   : > { %940 = vmatmul.mubr.msk.f32.vlgmr.msra.gmra.mrb[2].mxu1 %vm299_vm11, %v252_v20  ;;  %943 = vmatmul.mubr.msk.f32.vlgmr.msra.gmra.mrb[4].mxu0 %vm299_vm11, %v254_v27 }
 0x2c9   : > { %1007 = vmatpush1.bf16.msra.mxu1 %v986_v25  ;;  %787 = vmatprep.mubr.f32.mxu1 %v1299_v3 }
 0x2ca   : > { %1010 = vmatprep.subr.msk.bf16.mxu1 %vm1561_vm10, %v988_v32 }
 0x2cd   : > { %1013 = vmatpush1.bf16.msk.msra.mxu1 %vm1561_vm10, %v991_v31 }
 0x2d0   : > { %946 = vmatmul.mubr.msk.f32.vlgmr.msra.gmra.mrb[4].mxu1 %vm299_vm11, %v256_v33 }
 0x39b   : > { %v641_v34 = vpop.f32.mrb[2].mxu1  ;;  %v715_v35 = vpop.f32.mrb[4].mxu0 }
 0x39c   : > { %v643_v36 = vpop.f32.mrb[3].mxu1  ;;  %794 = vrot.lane.b32.xlu0 %v641_v34, %s1302_s26  ;;  %v717_v37 = vpop.f32.mrb[5].mxu0 }
 0x39d   : > { %796 = vrot.lane.b32.xlu1 %v643_v36, %s1302_s26 }
 0x3a3   : > { %v789_v3 = vpop.f32.mrb[4].mxu1 }
 0x3a4   : > { %802 = vrot.lane.b32.xlu0 %v789_v3, %s1303_s27  ;;  %v791_v39 = vpop.f32.mrb[5].mxu1 }
 0x3a5   : > { %804 = vrot.lane.b32.xlu1 %v791_v39, %s1303_s27 }
 0x40e   : > { %v795_v38 = vpop.permute.xlu0 %794 }
 0x40f   : > { %v797_v40 = vpop.permute.xlu1 %796 }
 0x410   : > { %v799_v41 = vsel %vm530_vm12, %v797_v40, %v795_v38  ;;  %v798_v42 = vsel %vm530_vm12, %v795_v38, %v797_v40 }
 0x411   : > { %v800_v44 = vadd.f32 %v799_v41, %v715_v35  ;;  %v801_v45 = vadd.f32 %v798_v42, %v717_v37 }
 0x416   : > { %v803_v43 = vpop.permute.xlu0 %802 }
 0x417   : > { %v805_v46 = vpop.permute.xlu1 %804 }
 0x418   : > { %v806_v47 = vsel %vm539_vm13, %v803_v43, %v805_v46  ;;  %v807_v48 = vsel %vm539_vm13, %v805_v46, %v803_v43 }
 0x419   : > { %v808_v49 = vadd.f32 %v806_v47, %v800_v44  ;;  %v809_v50 = vadd.f32 %v807_v48, %v801_v45 }
 0x41b   : > { %810 = vst [vmem:[%s215_s30] sm:$0xff] %v808_v49  ;;  %811 = vst [vmem:[%s215_s30 + $0x8] sm:$0xff] %v809_v50 }
 0x41c   : > { %1231 = shalt.err (!%p1228_p2)
}
 0x41d   : > { %s1232_s8 = scalar_lea.hbm %s1665_s11, 256  ;;  %s1236_s17 = scalar_lea.hbm %s1712_s3, 512 }
 0x41e   : > { %p1233_p13 = scmp.ne.s32.totalorder %s1665_s11, %s1232_s8  ;;  %p1237_p4 = scmp.lt.u32.totalorder %s1665_s11, %s1712_s3 }
 0x41f   : > { %p1238_p5 = scmp.lt.u32.totalorder %s1236_s17, %s1232_s8  ;;  %p1240_p11 = scmp.lt.u32.totalorder %s1232_s8, %s1665_s11 }
 0x420   : > { %p1234_p6 = pnand %p1233_p13, %p1736_p0 }
 0x421   : > { %p1239_p8 = por %p1238_p5, %p1237_p4 }
 0x422   : > { %p1235_p10 = pneg %p1234_p6 }
 0x423   : > { %p1241_p1 = por %p1240_p11, %p1239_p8 }
 0x425   : > { %p1242_p3 = pnand %p1241_p1, %p1235_p10 }
 0x427   : > { %1245 = shalt.err (!%p1242_p3)
}
 0x428   : > { %1024 = dma.vmem_to_hbm [thread:$0]  (%p1736_p0), %s1667_s23, 256, %s1665_s11, %s813_s16  }
 0x429 PF: > { %s839_s26 = sand.u32 1, %s1276_s12   ;;  %p1737_p7 = scmp.ne.s32.totalorder %s1717_s19, 0 }
 0x42a   : > { %p1738_p9 = scmp.ge.s32.totalorder %s1288_s15, 2  ;;  %s840_s27 = scalar_lea.sflag [#allocation4], %s839_s26 }
 0x42c   : > { %p1038_p12 = pnand %p1738_p9, %p1737_p7 }
 0x42e   : > { %1271 = dma.done.wait (!%p1038_p12), %s840_s27, 256  }
 0x42f   : > { %1273 = vsyncadd (!%p1038_p12), %s840_s27, 4294967040  ;;  %p17_p2 = scmp.ge.s32.totalorder %s1435_s4, 4   ;;  %s1739_s12 = smov %s1280_s13 }
 0x430   : > { %s1740_s13 = smov %s1284_s14  ;;  %s1741_s14 = smov %s1451_s9 }
 0x431   : > { %s1742_s15 = smov %s1435_s4  ;;  %19 = sbr.rel (!%p17_p2) target bundleno = 6 (0x6), region = 89 }
 0x438   :  { %845 = vsyncpa [#allocation3], 1 }
 0x439   :  { %847 = vsyncpa [#allocation3 + $0x1], 1 }
 0x43a   :  { %848 = vsyncpa [#allocation6], 1 }
 0x43b   :  { %849 = vsyncpa [#allocation4], 1 }
 0x43c   :  { %851 = vsyncpa [#allocation4 + $0x1], 1 }

</bundles_post_ra>
